<compile_context>
chip_gen: v6e
topology: v6e:2x2x1
jax: 0.10.0
libtpu: 0.0.40
codegen_flags: <defaults>
</compile_context>

<pallas_src>
import functools
import math

import jax
import jax.numpy as jnp
from jax.experimental import pallas as pl
from jax.experimental.pallas import tpu as pltpu

LANE = 128


def _round_up(x, m):
    return (x + m - 1) // m * m


# ----------------------------------------------------------------------------
# Pallas kernel: fused 3-layer MLP (Linear+ReLU, Linear+ReLU, Linear) for one
# (critic, batch-tile) grid point.  All weight refs are VMEM-resident blocks.
# ----------------------------------------------------------------------------
def soft_q_kernel(x_ref, w1_ref, b1_ref, w2_ref, b2_ref, w3_ref, b3_ref, o_ref):
    x = x_ref[...]                                            # (TB, S+A) bf16

    # Layer 1: single K=(S+A) matmul, f32 accumulate, f32 bias+ReLU (VPU).
    h1 = jnp.dot(x, w1_ref[...], preferred_element_type=jnp.float32)
    h1 = jnp.maximum(h1 + b1_ref[...], 0.0)                   # (TB, H1) f32

    # Layer 2: Linear + ReLU.
    h2 = jnp.dot(h1.astype(jnp.bfloat16), w2_ref[...],
                 preferred_element_type=jnp.float32)
    h2 = jnp.maximum(h2 + b2_ref[...], 0.0)                   # (TB, H2) f32

    # Output layer: (TB, H2) @ (H2, 128) -> lane-dense (TB, 128) block.
    # W3 is zero-padded beyond column 0, so only column 0 carries q.
    q = jnp.dot(h2.astype(jnp.bfloat16), w3_ref[...],
                preferred_element_type=jnp.float32)
    o_ref[...] = (q + b3_ref[...]).astype(o_ref.dtype)        # (TB, 128)


# ----------------------------------------------------------------------------
# One-time parameter preparation for N stacked critics: pad hidden dims to
# 128 lanes (exact through ReLU), pad W3 to a 128-lane column block, store
# matmul operands in bf16, biases in f32, and stack along a critic axis.
# ----------------------------------------------------------------------------
def prepare_params(params_per_critic, compute_dtype=jnp.bfloat16):
    w1s, b1s, w2s, b2s, w3s, b3s = [], [], [], [], [], []
    for (w1, b1), (w2, b2), (w3, b3) in params_per_critic:
        h1, h2 = w1.shape[1], w2.shape[1]
        h1p, h2p = _round_up(h1, LANE), _round_up(h2, LANE)
        w1s.append(jnp.pad(w1, ((0, 0), (0, h1p - h1))).astype(compute_dtype))
        b1s.append(jnp.pad(b1, ((0, 0), (0, h1p - h1))).astype(jnp.float32))
        w2s.append(jnp.pad(w2, ((0, h1p - h1), (0, h2p - h2))).astype(compute_dtype))
        b2s.append(jnp.pad(b2, ((0, 0), (0, h2p - h2))).astype(jnp.float32))
        # (H2, 1) -> (H2p, 128); only column 0 is real.
        w3s.append(jnp.pad(w3, ((0, h2p - h2), (0, LANE - 1))).astype(compute_dtype))
        b3s.append(b3.astype(jnp.float32))                     # (1, 1)
    stack = lambda xs: jnp.stack(xs, axis=0)
    return tuple(stack(xs) for xs in (w1s, b1s, w2s, b2s, w3s, b3s))


# ----------------------------------------------------------------------------
# Forward wrapper: one pallas_call for all critics, batch-tiled.
# Returns (n_critics, B, 1) f32 (PyTorch column layout per critic).
# ----------------------------------------------------------------------------
def soft_q_forward(state, action, prepared, *, block_b=2048):
    w1, b1, w2, b2, w3, b3 = prepared
    n_critics, K, H1 = w1.shape
    H2 = w2.shape[2]
    B = state.shape[0]
    assert state.shape[1] + action.shape[1] == K

    # Batch tile: forced multiple of 128 (lane-aligned blocks / unmasked vst),
    # large by default to amortize per-grid-step overhead.
    TB = _round_up(min(block_b, max(B, LANE)), LANE)
    # v7x megacore: if the whole call would be one grid step, split the batch
    # so the second TensorCore gets work (per-tile VMEM is tiny, so it's free).
    if n_critics == 1 and B > LANE and B <= TB:
        TB = _round_up(pl.cdiv(B, 2), LANE)
    Bp = _round_up(B, TB)

    # Concat + bf16 cast once in the wrapper: single streamed input, single
    # K=(S+A) matmul in the kernel, half the input HBM bytes.
    x = jnp.concatenate([state, action], axis=1).astype(jnp.bfloat16)
    if Bp != B:
        x = jnp.pad(x, ((0, Bp - B), (0, 0)))

    grid = (n_critics, Bp // TB)

    flops = 2 * n_critics * Bp * (K * H1 + H1 * H2 + H2 * LANE)
    bytes_accessed = int(
        n_critics * Bp * K * x.dtype.itemsize          # input tiles per critic
        + n_critics * Bp * LANE * 4                    # f32 output blocks
        + sum(int(a.size) * a.dtype.itemsize for a in prepared))

    out = pl.pallas_call(
        soft_q_kernel,
        out_shape=jax.ShapeDtypeStruct((n_critics, Bp, LANE), jnp.float32),
        grid=grid,
        in_specs=[
            pl.BlockSpec((TB, K), lambda c, i: (i, 0)),            # x tile (shared)
            pl.BlockSpec((None, K, H1), lambda c, i: (c, 0, 0)),   # W1  (per critic)
            pl.BlockSpec((None, 1, H1), lambda c, i: (c, 0, 0)),   # b1
            pl.BlockSpec((None, H1, H2), lambda c, i: (c, 0, 0)),  # W2
            pl.BlockSpec((None, 1, H2), lambda c, i: (c, 0, 0)),   # b2
            pl.BlockSpec((None, H2, LANE), lambda c, i: (c, 0, 0)),  # W3 (padded)
            pl.BlockSpec((None, 1, 1), lambda c, i: (c, 0, 0)),    # b3
        ],
        out_specs=pl.BlockSpec((None, TB, LANE), lambda c, i: (c, i, 0)),
        compiler_params=pltpu.CompilerParams(
            dimension_semantics=("parallel", "parallel"),
            vmem_limit_bytes=32 * 1024 * 1024),
        cost_estimate=pl.CostEstimate(
            flops=flops, transcendentals=0, bytes_accessed=bytes_accessed),
    )(x, w1, b1, w2, b2, w3, b3)

    return out[:, :B, :1]                               # (n_critics, B, 1)


# ----------------------------------------------------------------------------
# Deterministic parameter init (mirrors PyTorch nn.Linear defaults + init_w on
# the last layer).  Weights stored as (in, out); biases as (1, out).
# ----------------------------------------------------------------------------
def init_params(key, state_dim, action_dim, hidden_layer_sizes=(64, 64),
                init_w=0.003):
    dims = [state_dim + action_dim] + list(hidden_layer_sizes) + [1]
    params = []
    for i in range(len(dims) - 1):
        fan_in, fan_out = dims[i], dims[i + 1]
        key, kw, kb = jax.random.split(key, 3)
        bound = init_w if i == len(dims) - 2 else 1.0 / math.sqrt(fan_in)
        w = jax.random.uniform(kw, (fan_in, fan_out), jnp.float32,
                               minval=-bound, maxval=bound)
        b = jax.random.uniform(kb, (1, fan_out), jnp.float32,
                               minval=-bound, maxval=bound)
        params.append((w, b))
    return params


# ----------------------------------------------------------------------------
# Pure-JAX f32 reference (single critic).
# ----------------------------------------------------------------------------
def soft_q_reference(state, action, params):
    x = jnp.concatenate([state, action], axis=1)
    (w1, b1), (w2, b2), (w3, b3) = params
    x = jnp.maximum(x @ w1 + b1, 0.0)
    x = jnp.maximum(x @ w2 + b2, 0.0)
    return x @ w3 + b3


if __name__ == "__main__":
    key = jax.random.PRNGKey(0)
    k_q1, k_q2, k_state, k_action = jax.random.split(key, 4)

    batch, state_dim, action_dim = 8, 12, 4
    params_q1 = init_params(k_q1, state_dim, action_dim, (64, 64), 0.003)
    params_q2 = init_params(k_q2, state_dim, action_dim, (64, 64), 0.003)
    prepared = prepare_params([params_q1, params_q2])          # 2 fused critics

    state = jax.random.normal(k_state, (batch, state_dim), jnp.float32)
    action = jax.random.normal(k_action, (batch, action_dim), jnp.float32)

    fwd = jax.jit(functools.partial(soft_q_forward, block_b=2048))
    out = jax.block_until_ready(fwd(state, action, prepared))
    assert out.shape == (2, batch, 1)

    # bf16 MXU operands with f32 accumulation -> loosened tolerance vs f32 ref.
    for c, params in enumerate((params_q1, params_q2)):
        ref = soft_q_reference(state, action, params)
        err = float(jnp.max(jnp.abs(out[c] - ref)))
        assert jnp.allclose(out[c], ref, rtol=2e-2, atol=2e-3), (c, err)

    print("KERNEL_OK")
</pallas_src>

<mosaic_0001>
module attributes {stable_mosaic.version = 11 : i64} {
  func.func @soft_q_kernel(%arg0: i32, %arg1: i32, %arg2: memref<128x16xbf16, #tpu.memory_space<vmem>>, %arg3: memref<1x16x128xbf16, #tpu.memory_space<vmem>>, %arg4: memref<1x1x128xf32, #tpu.memory_space<vmem>>, %arg5: memref<1x128x128xbf16, #tpu.memory_space<vmem>>, %arg6: memref<1x1x128xf32, #tpu.memory_space<vmem>>, %arg7: memref<1x128x128xbf16, #tpu.memory_space<vmem>>, %arg8: memref<1x1x1xf32, #tpu.memory_space<vmem>>, %arg9: memref<1x128x128xf32, #tpu.memory_space<vmem>>) attributes {dimension_semantics = [#tpu.dimension_semantics<parallel>, #tpu.dimension_semantics<parallel>], iteration_bounds = array<i64: 2, 1>, scalar_prefetch = 0 : i64, scratch_operands = 0 : i64, tpu.core_type = #tpu.core_type<tc>, window_params = [{transform_indices = @transform_0, window_bounds = array<i64: 128, 16>}, {transform_indices = @transform_1, window_bounds = array<i64: 1, 16, 128>}, {transform_indices = @transform_2, window_bounds = array<i64: 1, 1, 128>}, {transform_indices = @transform_3, window_bounds = array<i64: 1, 128, 128>}, {transform_indices = @transform_4, window_bounds = array<i64: 1, 1, 128>}, {transform_indices = @transform_5, window_bounds = array<i64: 1, 128, 128>}, {transform_indices = @transform_6, window_bounds = array<i64: 1, 1, 1>}, {transform_indices = @transform_7, window_bounds = array<i64: 1, 128, 128>}]} {
    %c0 = arith.constant 0 : index
    %c0_0 = arith.constant 0 : index
    %0 = vector.load %arg2[%c0, %c0_0] : memref<128x16xbf16, #tpu.memory_space<vmem>>, vector<128x16xbf16>
    %c0_1 = arith.constant 0 : index
    %c0_2 = arith.constant 0 : index
    %c0_3 = arith.constant 0 : index
    %1 = vector.load %arg3[%c0_1, %c0_2, %c0_3] : memref<1x16x128xbf16, #tpu.memory_space<vmem>>, vector<1x16x128xbf16>
    %2 = vector.shape_cast %1 : vector<1x16x128xbf16> to vector<16x128xbf16>
    %cst = arith.constant dense<0.000000e+00> : vector<128x128xf32>
    %3 = tpu.matmul %0, %2, %cst {dimension_numbers = #tpu.dot_dimension_numbers<[1], [0], [0], [1], [0, 0, 1, 1], [], []>} : vector<128x16xbf16>, vector<16x128xbf16>, vector<128x128xf32> -> vector<128x128xf32>
    %c0_4 = arith.constant 0 : index
    %c0_5 = arith.constant 0 : index
    %c0_6 = arith.constant 0 : index
    %4 = vector.load %arg4[%c0_4, %c0_5, %c0_6] : memref<1x1x128xf32, #tpu.memory_space<vmem>>, vector<1x1x128xf32>
    %5 = vector.shape_cast %4 : vector<1x1x128xf32> to vector<1x128xf32>
    %6 = vector.broadcast %5 : vector<1x128xf32> to vector<128x128xf32>
    %7 = arith.addf %3, %6 : vector<128x128xf32>
    %cst_7 = arith.constant 0.000000e+00 : f32
    %8 = vector.broadcast %cst_7 : f32 to vector<128x128xf32>
    %9 = arith.maximumf %7, %8 : vector<128x128xf32>
    %10 = arith.truncf %9 : vector<128x128xf32> to vector<128x128xbf16>
    %c0_8 = arith.constant 0 : index
    %c0_9 = arith.constant 0 : index
    %c0_10 = arith.constant 0 : index
    %11 = vector.load %arg5[%c0_8, %c0_9, %c0_10] : memref<1x128x128xbf16, #tpu.memory_space<vmem>>, vector<1x128x128xbf16>
    %12 = vector.shape_cast %11 : vector<1x128x128xbf16> to vector<128x128xbf16>
    %cst_11 = arith.constant dense<0.000000e+00> : vector<128x128xf32>
    %13 = tpu.matmul %10, %12, %cst_11 {dimension_numbers = #tpu.dot_dimension_numbers<[1], [0], [0], [1], [0, 0, 1, 1], [], []>} : vector<128x128xbf16>, vector<128x128xbf16>, vector<128x128xf32> -> vector<128x128xf32>
    %c0_12 = arith.constant 0 : index
    %c0_13 = arith.constant 0 : index
    %c0_14 = arith.constant 0 : index
    %14 = vector.load %arg6[%c0_12, %c0_13, %c0_14] : memref<1x1x128xf32, #tpu.memory_space<vmem>>, vector<1x1x128xf32>
    %15 = vector.shape_cast %14 : vector<1x1x128xf32> to vector<1x128xf32>
    %16 = vector.broadcast %15 : vector<1x128xf32> to vector<128x128xf32>
    %17 = arith.addf %13, %16 : vector<128x128xf32>
    %cst_15 = arith.constant 0.000000e+00 : f32
    %18 = vector.broadcast %cst_15 : f32 to vector<128x128xf32>
    %19 = arith.maximumf %17, %18 : vector<128x128xf32>
    %20 = arith.truncf %19 : vector<128x128xf32> to vector<128x128xbf16>
    %c0_16 = arith.constant 0 : index
    %c0_17 = arith.constant 0 : index
    %c0_18 = arith.constant 0 : index
    %21 = vector.load %arg7[%c0_16, %c0_17, %c0_18] : memref<1x128x128xbf16, #tpu.memory_space<vmem>>, vector<1x128x128xbf16>
    %22 = vector.shape_cast %21 : vector<1x128x128xbf16> to vector<128x128xbf16>
    %cst_19 = arith.constant dense<0.000000e+00> : vector<128x128xf32>
    %23 = tpu.matmul %20, %22, %cst_19 {dimension_numbers = #tpu.dot_dimension_numbers<[1], [0], [0], [1], [0, 0, 1, 1], [], []>} : vector<128x128xbf16>, vector<128x128xbf16>, vector<128x128xf32> -> vector<128x128xf32>
    %c0_20 = arith.constant 0 : index
    %c0_21 = arith.constant 0 : index
    %c0_22 = arith.constant 0 : index
    %24 = vector.load %arg8[%c0_20, %c0_21, %c0_22] : memref<1x1x1xf32, #tpu.memory_space<vmem>>, vector<1x1x1xf32>
    %25 = vector.shape_cast %24 : vector<1x1x1xf32> to vector<1x1xf32>
    %26 = vector.broadcast %25 : vector<1x1xf32> to vector<128x128xf32>
    %27 = arith.addf %23, %26 : vector<128x128xf32>
    %c0_23 = arith.constant 0 : index
    %c0_24 = arith.constant 0 : index
    %c0_25 = arith.constant 0 : index
    %28 = vector.load %arg9[%c0_23, %c0_24, %c0_25] : memref<1x128x128xf32, #tpu.memory_space<vmem>>, vector<1x128x128xf32>
    %29 = vector.shape_cast %28 : vector<1x128x128xf32> to vector<128x128xf32>
    %30 = vector.shape_cast %27 : vector<128x128xf32> to vector<1x128x128xf32>
    tpu.vector_store %arg9[%c0_23, %c0_24, %c0_25], %30 {strides = array<i32>} : memref<1x128x128xf32, #tpu.memory_space<vmem>>, vector<1x128x128xf32>,
    return
  }
  func.func @transform_0(%arg0: i32, %arg1: i32) -> (i32, i32) {
    %c0_i32 = arith.constant 0 : i32
    %c0_i32_0 = arith.constant 0 : i32
    return %arg1, %c0_i32 : i32, i32
  }
  func.func @transform_1(%arg0: i32, %arg1: i32) -> (i32, i32, i32) {
    %c0_i32 = arith.constant 0 : i32
    %c0_i32_0 = arith.constant 0 : i32
    %c0_i32_1 = arith.constant 0 : i32
    return %arg0, %c0_i32, %c0_i32_0 : i32, i32, i32
  }
  func.func @transform_2(%arg0: i32, %arg1: i32) -> (i32, i32, i32) {
    %c0_i32 = arith.constant 0 : i32
    %c0_i32_0 = arith.constant 0 : i32
    %c0_i32_1 = arith.constant 0 : i32
    return %arg0, %c0_i32, %c0_i32_0 : i32, i32, i32
  }
  func.func @transform_3(%arg0: i32, %arg1: i32) -> (i32, i32, i32) {
    %c0_i32 = arith.constant 0 : i32
    %c0_i32_0 = arith.constant 0 : i32
    %c0_i32_1 = arith.constant 0 : i32
    return %arg0, %c0_i32, %c0_i32_0 : i32, i32, i32
  }
  func.func @transform_4(%arg0: i32, %arg1: i32) -> (i32, i32, i32) {
    %c0_i32 = arith.constant 0 : i32
    %c0_i32_0 = arith.constant 0 : i32
    %c0_i32_1 = arith.constant 0 : i32
    return %arg0, %c0_i32, %c0_i32_0 : i32, i32, i32
  }
  func.func @transform_5(%arg0: i32, %arg1: i32) -> (i32, i32, i32) {
    %c0_i32 = arith.constant 0 : i32
    %c0_i32_0 = arith.constant 0 : i32
    %c0_i32_1 = arith.constant 0 : i32
    return %arg0, %c0_i32, %c0_i32_0 : i32, i32, i32
  }
  func.func @transform_6(%arg0: i32, %arg1: i32) -> (i32, i32, i32) {
    %c0_i32 = arith.constant 0 : i32
    %c0_i32_0 = arith.constant 0 : i32
    %c0_i32_1 = arith.constant 0 : i32
    return %arg0, %c0_i32, %c0_i32_0 : i32, i32, i32
  }
  func.func @transform_7(%arg0: i32, %arg1: i32) -> (i32, i32, i32) {
    %c0_i32 = arith.constant 0 : i32
    %c0_i32_0 = arith.constant 0 : i32
    return %arg0, %arg1, %c0_i32 : i32, i32, i32
  }
}

</mosaic_0001>

<bundles_post_ra>
// kernel: soft_q_forward.1
= control target key start
LH: loop header
LB: loop body
LE: loop exit
PB: predicated region body
PF: predicated region fallthrough
CT: control target
= control target key end

     0   :  { %s1856_s0 = inlined_call_operand.vmem [shape: bf16[128,16], index: 0, kind: input, shape index: {}]   ;;  %s1857_s1 = inlined_call_operand.vmem [shape: bf16[2,16,128], index: 1, kind: input, shape index: {}]   ;;  %s1858_s2 = inlined_call_operand.vmem [shape: f32[2,1,128], index: 2, kind: input, shape index: {}]   ;;  %s1859_s3 = inlined_call_operand.hbm [shape: bf16[2,128,128], index: 3, kind: input, shape index: {}]   ;;  %s1860_s4 = inlined_call_operand.vmem [shape: f32[2,1,128], index: 4, kind: input, shape index: {}]   ;;  %s1861_s5 = inlined_call_operand.hbm [shape: bf16[2,128,128], index: 5, kind: input, shape index: {}]   ;;  %s1862_s6 = inlined_call_operand.vmem [shape: f32[2,1,1], index: 6, kind: input, shape index: {}]   ;;  %s1863_s7 = inlined_call_operand.vmem [shape: f32[2,128,128], index: 7, kind: output, shape index: {}]  }
   0x1   :  { %1865 = sst [smem:[#allocation9_spill]] %s1859_s3 }
   0x2   :  { %12 = vsyncpa [#allocation3], 0 }
   0x3   :  { %14 = vsyncpa [#allocation3 + $0x1], 0 }
   0x4   :  { %15 = vsyncpa [#allocation5], 0 }
   0x5   :  { %17 = vsyncpa [#allocation5 + $0x1], 0  ;;  %s1641_s24 = smov 0   ;;  %s1643_s25 = smov 0  }
   0x6   :  { %s1645_s26 = smov 0   ;;  %s1647_s27 = smov 0  }
   0x7   :  { %s1649_s28 = smov 0   ;;  %s1651_s29 = smov 0  }
   0x8 LB: > { %s1212_s30 = sadd.s32 4294967295, %s1594_s29   ;;  %s35_s8 = sadd.s32 1, %s1590_s28  ;;  %s1594_s29 = sphi %s1651_s29, %s23_s29   ;;  %s1590_s28 = sphi %s1649_s28, %s1877_s28   ;;  %s1586_s27 = sphi %s1647_s27, %s1876_s27   ;;  %s1582_s26 = sphi %s1645_s26, %s1875_s26   ;;  %s1578_s25 = sphi %s1643_s25, %s1874_s25   ;;  %s1574_s24 = sphi %s1641_s24, %s1873_s24  }
   0x9   : > { %p37_p0 = scmp.ge.s32.totalorder %s35_s8, 2  ;;  %s120_s9 = sadd.s32 1, %s1582_s26 }
   0xa   : > { %p127_p1 = scmp.ne.s32.totalorder %s1582_s26, %s1578_s25  ;;  %p128_p2 = scmp.eq.s32.totalorder %s1594_s29, 0 }
   0xb   : > { %s1879_s8 = smov (%p37_p0, %s35_s8), 0  ;;  %p133_p4 = scmp.ne.s32.totalorder %s1578_s25, %s1574_s24 }
   0xc   : > { %1866 = sst [smem:[#allocation8_spill]] %s1879_s8  ;;  %p1677_p3 = por %p128_p2, %p127_p1 }
   0xd   : > { %s117_s11 = ssub.s32 %s1590_s28, %s1879_s8  ;;  %p134_p5 = scmp.eq.s32.totalorder %s1212_s30, 0 }
   0xe   : > { %p118_p6 = scmp.eq.s32.totalorder %s117_s11, 0  ;;  %p1406_p8 = scmp.lt.s32.totalorder %s1594_s29, 2 }
   0xf   : > { %p1684_p7 = por %p134_p5, %p133_p4  ;;  %s1693_s14 = sand.u32 1, %s1582_s26  }
  0x10   : > { %s1690_s13 = scalar_select %p118_p6, %s1582_s26, %s120_s9  }
  0x11   : > { %s1268_s15 = sshll.u32 %s1590_s28, 10  ;;  %s1217_s16 = sshll.u32 %s1693_s14, 6 }
  0x12   : > { %s1869_s3 = sld [smem:[#allocation9_spill]]  ;;  %s290_s20 = scalar_lea.vmem [#allocation2], %s1217_s16 }
  0x13   : > { %s297_s21 = sshll.u32 %s290_s20, 4  ;;  %p1704_p9 = pnand %p1406_p8, %p1677_p3  ;;  %s298_s21 = int_to_ptr.vmem [resolvable:$true] %s297_s21 }
  0x14   : > { %s287_s23 = scalar_lea.sflag [#allocation3], %s1693_s14  ;;  %s1497_s24 = scalar_lea.vmem %s298_s21, 1024 }
  0x15   : > { %p1486_p10 = pneg %p1704_p9  ;;  %p1498_p11 = scmp.ne.s32.totalorder %s298_s21, %s1497_s24 }
  0x16   : > { %s1596_s30 = smov [#allocation2]  }
  0x17   : > { %p1500_p12 = pnand %p1498_p11, %p1486_p10  ;;  %s1502_s9 = sshll.u32 %s1596_s30, 4  ;;  %s1503_s9 = int_to_ptr.vmem [resolvable:$false] %s1502_s9 }
  0x18   : > { %s296_s19 = scalar_lea.hbm %s1869_s3, %s1268_s15  ;;  %s1504_s10 = scalar_lea.vmem %s1503_s9, 2048 }
  0x19   : > { %p1501_p13 = pneg %p1500_p12  ;;  %p1505_p0 = scmp.lt.s32.totalorder %s298_s21, %s1503_s9 }
  0x1a   : > { %p1506_p1 = scmp.lt.s32.totalorder %s1504_s10, %s1497_s24 }
  0x1c   : > { %p1507_p2 = por %p1506_p1, %p1505_p0 }
  0x1e   : > { %p1508_p3 = pnand %p1507_p2, %p1501_p13 }
  0x20   : > { %1511 = shalt.err (!%p1508_p3)
}
  0x21   : > { %s1597_s11 = smov 64   ;;  %s1598_s17 = smov 4  }
  0x22   : > { %1402 = dma.hbm_to_vmem [thread:$0]  (!%p1704_p9), %s296_s19, 1024, %s298_s21, %s287_s23, %s1597_s11, %s1597_s11, %s1598_s17  }
  0x23   : > { %p1223_p4 = scmp.ge.s32.totalorder %s1594_s29, 1  ;;  %p338_p5 = scmp.lt.s32.totalorder %s1594_s29, 3 }
  0x24   : > { %s323_s30 = scalar_lea.hbm %s1861_s5, %s1268_s15  ;;  %s317_s9 = scalar_lea.vmem [#allocation4], %s1217_s16 }
  0x25   : > { %p1718_p6 = pnand %p1223_p4, %p338_p5  ;;  %s324_s10 = sshll.u32 %s317_s9, 4  ;;  %s325_s10 = int_to_ptr.vmem [resolvable:$true] %s324_s10 }
  0x26   : > { %s314_s3 = scalar_lea.sflag [#allocation5], %s1693_s14  ;;  %s1525_s8 = scalar_lea.vmem %s325_s10, 1024 }
  0x27   : > { %p1526_p8 = scmp.ne.s32.totalorder %s325_s10, %s1525_s8  ;;  %s1599_s19 = smov [#allocation4]  }
  0x28   : > { %s1530_s21 = sshll.u32 %s1599_s19, 4  ;;  %s1531_s21 = int_to_ptr.vmem [resolvable:$false] %s1530_s21 }
  0x29   : > { %p1528_p11 = pnand %p1526_p8, %p1486_p10  ;;  %s1532_s23 = scalar_lea.vmem %s1531_s21, 2048 }
  0x2a   : > { %p1533_p13 = scmp.lt.s32.totalorder %s325_s10, %s1531_s21  ;;  %p1534_p0 = scmp.lt.s32.totalorder %s1532_s23, %s1525_s8 }
  0x2b   : > { %p1529_p12 = pneg %p1528_p11 }
  0x2c   : > { %p1535_p1 = por %p1534_p0, %p1533_p13 }
  0x2e   : > { %p1536_p2 = pnand %p1535_p1, %p1529_p12 }
  0x30   : > { %1539 = shalt.err (!%p1536_p2)
}
  0x31   : > { %1405 = dma.hbm_to_vmem [thread:$0]  (!%p1704_p9), %s323_s30, 1024, %s325_s10, %s314_s3, %s1597_s11, %s1597_s11, %s1598_s17  }
  0x32   : > { %342 = sbr.rel (%p1718_p6) target bundleno = 706 (0x2c2), region = 48  ;;  %s344_s14 = sand.u32 (!%p1718_p6), 1, %s1578_s25  }
  0x33   : > { %s1224_s15 = sshll.u32 (!%p1718_p6), %s344_s14, 6  ;;  %s345_s16 = scalar_lea.sflag (!%p1718_p6), [#allocation3], %s344_s14 }
  0x34   : > { %s1736_s20 = scalar_lea.vmem (!%p1718_p6), [#allocation2], %s1224_s15 }
  0x37   : > { %1565 = dma.done.wait (%p1684_p7), %s345_s16, 1024  }
  0x38   : > { %1567 = vsyncadd (%p1684_p7), %s345_s16, 4294966272  ;;  %s354_s8 = scalar_lea.sflag [#allocation5], %s344_s14  ;;  %s1742_s24 = scalar_lea.vmem [#allocation4], %s1224_s15 }
  0x39   : > { %1569 = dma.done.wait (%p1684_p7), %s354_s8, 1024  }
  0x3a   : > { %1571 = vsyncadd (%p1684_p7), %s354_s8, 4294966272  ;;  %p422_p9 = scmp.lt.s32.totalorder %s1586_s27, 1  ;;  %vm518_vm0 = vcmask 130048   ;;  %v1460_v1 = vld [vmem:[%s1856_s0] sm:$0xff]   ;;  %v1461_v2 = vld [vmem:[%s1856_s0 + $0x8] sm:$0xff]  }
  0x3b   : > { %1315 = vmatprep.mubr.msk.bf16.mxu0 %vm518_vm0, %v1460_v1  ;;  %v1462_v3 = vld [vmem:[%s1856_s0 + $0x10] sm:$0xff]   ;;  %v1463_v4 = vld [vmem:[%s1856_s0 + $0x18] sm:$0xff]   ;;  %v1464_v5 = vld [vmem:[%s1856_s0 + $0x20] sm:$0xff]  }
  0x3c   : > { %s1881_s27 = smov (!%p422_p9, %s1586_s27), 1  ;;  %v1468_v6 = vld [vmem:[%s1736_s20 + $0x38] sm:$0xff]   ;;  %v1469_v7 = vld [vmem:[%s1736_s20 + $0x30] sm:$0xff]   ;;  %v1470_v8 = vld [vmem:[%s1736_s20 + $0x28] sm:$0xff]  }
  0x3d   : > { %s1270_s3 = sshll.u32 %s1881_s27, 3  ;;  %1331 = vmatprep.subr.bf16.mxu1 %v1468_v6  ;;  %v1465_v9 = vld [vmem:[%s1856_s0 + $0x28] sm:$0xff]   ;;  %v1471_v10 = vld [vmem:[%s1736_s20 + $0x20] sm:$0xff]   ;;  %v1466_v11 = vld [vmem:[%s1856_s0 + $0x30] sm:$0xff]   ;;  %s429_s30 = scalar_lea.vmem %s1858_s2, %s1881_s27 }
  0x3e   : > { %s426_s17 = scalar_lea.vmem %s1857_s1, %s1270_s3  ;;  %1332 = vmatpush3.bf16.msra.mxu1 %v1468_v6  ;;  %v1472_v12 = vld [vmem:[%s1736_s20 + $0x18] sm:$0xff]   ;;  %v1473_v14 = vld [vmem:[%s1736_s20 + $0x10] sm:$0xff]   ;;  %v1474_v15 = vld [vmem:[%s1736_s20 + $0x8] sm:$0xff]   ;;  %s435_s10 = scalar_lea.vmem %s1862_s6, %s1881_s27 }
  0x3f   : > { %v1459_v0 = vld [vmem:[%s426_s17] sm:$0xff]   ;;  %1333 = vmatprep.subr.bf16.mxu1 %v1469_v7  ;;  %v1467_v13 = vld [vmem:[%s1856_s0 + $0x38] sm:$0xff]   ;;  %v1477_v18 = vld [vmem:[%s1742_s24 + $0x30] sm:$0xff]   ;;  %s432_s23 = scalar_lea.vmem %s1860_s4, %s1881_s27 }
  0x40   : > { %1313 = vmatprep.subr.bf16.mxu0 %v1459_v0  ;;  %v1475_v16 = vld [vmem:[%s1736_s20] sm:$0xff]   ;;  %v1476_v17 = vld [vmem:[%s1742_s24 + $0x38] sm:$0xff]   ;;  %v1478_v19 = vld [vmem:[%s1742_s24 + $0x28] sm:$0xff]  }
  0x41   : > { %1314 = vmatpush3.bf16.msra.mxu0 %v1459_v0  ;;  %v1479_v20 = vld [vmem:[%s1742_s24 + $0x20] sm:$0xff]   ;;  %v1480_v21 = vld [vmem:[%s1742_s24 + $0x18] sm:$0xff]  }
  0x42   : > { %1334 = vmatpush3.bf16.msra.mxu1 %v1469_v7  ;;  %1363 = vmatprep.subr.bf16.mxu0 %v1476_v17  ;;  %v1230_v24 = vld [vmem:[%s429_s30] ss:$0 sm:$0xff] }
  0x43   : > { %1335 = vmatprep.subr.bf16.mxu1 %v1470_v8 }
  0x44   : > { %1316 = vmatmul.mubr.msk.bf16.vlgmr.msra.gmra.mxu0 %vm518_vm0, %v1461_v2 }
  0x45   : > { %1319 = vmatprep.mubr.msk.bf16.mxu0 %vm518_vm0, %v1462_v3  ;;  %1364 = vmatpush3.bf16.msra.mxu0 %v1476_v17  ;;  %v1483_v17 = vld [vmem:[%s1742_s24] sm:$0xff]  }
  0x46   : > { %1336 = vmatpush3.bf16.msra.mxu1 %v1470_v8  ;;  %1365 = vmatprep.subr.bf16.mxu0 %v1477_v18 }
  0x47   : > { %1337 = vmatprep.subr.bf16.mxu1 %v1471_v10 }
  0x49   : > { %1366 = vmatpush3.bf16.msra.mxu0 %v1477_v18  ;;  %v1600_v18 = vmov 0  }
  0x4a   : > { %1338 = vmatpush3.bf16.msra.mxu1 %v1471_v10  ;;  %1367 = vmatprep.subr.bf16.mxu0 %v1478_v19 }
  0x4b   : > { %1339 = vmatprep.subr.bf16.mxu1 %v1472_v12  ;;  %1458 = vset.pattern.permute.xlu0 %v1600_v18 }
  0x4c   : > { %1320 = vmatmul.mubr.msk.bf16.gmra.mxu0 %vm518_vm0, %v1463_v4 }
  0x4d   : > { %1323 = vmatprep.mubr.msk.bf16.mxu0 %vm518_vm0, %v1464_v5  ;;  %1368 = vmatpush3.bf16.msra.mxu0 %v1478_v19  ;;  %v1257_v19 = vld [vmem:[%s435_s10] ss:$0 sm:$0xff] }
  0x4e   : > { %1340 = vmatpush3.bf16.msra.mxu1 %v1472_v12  ;;  %1369 = vmatprep.subr.bf16.mxu0 %v1479_v20 }
  0x4f   : > { %1341 = vmatprep.subr.bf16.mxu1 %v1473_v14  ;;  %879 = vperm.xlu0 %1458, %v1257_v19  }
  0x51   : > { %1370 = vmatpush3.bf16.msra.mxu0 %v1479_v20 }
  0x52   : > { %1342 = vmatpush3.bf16.msra.mxu1 %v1473_v14  ;;  %1371 = vmatprep.subr.bf16.mxu0 %v1480_v21 }
  0x53   : > { %1343 = vmatprep.subr.bf16.mxu1 %v1474_v15 }
  0x54   : > { %1324 = vmatmul.mubr.msk.bf16.gmra.mxu0 %vm518_vm0, %v1465_v9 }
  0x55   : > { %1327 = vmatprep.mubr.msk.bf16.mxu0 %vm518_vm0, %v1466_v11  ;;  %1372 = vmatpush3.bf16.msra.mxu0 %v1480_v21 }
  0x56   : > { %1344 = vmatpush3.bf16.msra.mxu1 %v1474_v15  ;;  %v1481_v15 = vld [vmem:[%s1742_s24 + $0x10] sm:$0xff]  }
  0x57   : > { %1345 = vmatprep.subr.bf16.mxu1 %v1475_v16  ;;  %1373 = vmatprep.subr.bf16.mxu0 %v1481_v15 }
  0x59   : > { %1374 = vmatpush3.bf16.msra.mxu0 %v1481_v15 }
  0x5a   : > { %1346 = vmatpush3.bf16.msra.mxu1 %v1475_v16  ;;  %v1482_v16 = vld [vmem:[%s1742_s24 + $0x8] sm:$0xff]   ;;  %s1271_s24 = sshll.u32 %s1881_s27, 7 }
  0x5b   : > { %1375 = vmatprep.subr.bf16.mxu0 %v1482_v16  ;;  %s1820_s16 = scalar_lea.vmem %s1863_s7, %s1271_s24 }
  0x5c   : > { %1328 = vmatmul.mubr.msk.bf16.gmra.mxu0 %vm518_vm0, %v1467_v13 }
  0x5d   : > { %1376 = vmatpush3.bf16.msra.mxu0 %v1482_v16 }
  0x5e   : > { %1377 = vmatprep.subr.bf16.mxu0 %v1483_v17 }
  0x61   : > { %1378 = vmatpush3.bf16.msra.mxu0 %v1483_v17 }
 0x104   : > { %v1317_v22 = vpop.f32.mrf.mxu0 }
 0x105   : > { %v586_v28 = vadd.f32 %v1317_v22, %v1230_v24  ;;  %v1248_v22 = vld [vmem:[%s432_s23] ss:$0 sm:$0xff] }
 0x106   : > { %v577_v23 = vpop.f32.mrf.mxu0 }
 0x107   : > { %v578_v26 = vadd.f32 %v1230_v24, %v577_v23  ;;  %v642_v35 = vmax.f32 %v586_v28, 0.0 }
 0x108   : > { %v1318_v25 = vpop.f32.mrf.mxu0 }
 0x109   : > { %v589_v27 = vadd.f32 %v1318_v25, %v1230_v24  ;;  %v640_v33 = vmax.f32 %v578_v26, 0.0 }
 0x10a   : > { %v580_v29 = vpop.f32.mrf.mxu0 }
 0x10b   : > { %v581_v30 = vadd.f32 %v1230_v24, %v580_v29  ;;  %v643_v31 = vmax.f32 %v589_v27, 0.0 }
 0x10c   : > { %v1321_v32 = vpop.f32.mrf.mxu0 }
 0x10d   : > { %v641_v34 = vmax.f32 %v581_v30, 0.0  ;;  %v657_v38 = vpack.c.bf16 %v643_v31, %v642_v35  ;;  %v602_v42 = vadd.f32 %v1321_v32, %v1230_v24 }
 0x10e   : > { %v593_v36 = vpop.f32.mrf.mxu0 }
 0x10f   : > { %v656_v37 = vpack.c.bf16 %v641_v34, %v640_v33  ;;  %v594_v40 = vadd.f32 %v1230_v24, %v593_v36  ;;  %v646_v49 = vmax.f32 %v602_v42, 0.0 }
 0x110   : > { %v1322_v39 = vpop.f32.mrf.mxu0 }
 0x111   : > { %v605_v41 = vadd.f32 %v1322_v39, %v1230_v24  ;;  %1347 = vmatprep.mubr.bf16.mxu1 %v656_v37  ;;  %v644_v47 = vmax.f32 %v594_v40, 0.0 }
 0x112   : > { %v596_v43 = vpop.f32.mrf.mxu0  ;;  %1348 = vmatmul.mubr.bf16.vlgmr.msra.gmra.mxu1 %v657_v38 }
 0x113   : > { %v597_v44 = vadd.f32 %v1230_v24, %v596_v43  ;;  %v647_v45 = vmax.f32 %v605_v41, 0.0 }
 0x114   : > { %v1325_v46 = vpop.f32.mrf.mxu0 }
 0x115   : > { %v645_v48 = vmax.f32 %v597_v44, 0.0  ;;  %v659_v52 = vpack.c.bf16 %v647_v45, %v646_v49  ;;  %v618_v56 = vadd.f32 %v1325_v46, %v1230_v24 }
 0x116   : > { %v609_v50 = vpop.f32.mrf.mxu0 }
 0x117   : > { %v658_v51 = vpack.c.bf16 %v645_v48, %v644_v47  ;;  %v610_v54 = vadd.f32 %v1230_v24, %v609_v50  ;;  %v650_v63 = vmax.f32 %v618_v56, 0.0 }
 0x118   : > { %v1326_v53 = vpop.f32.mrf.mxu0 }
 0x119   : > { %v621_v55 = vadd.f32 %v1326_v53, %v1230_v24  ;;  %1351 = vmatprep.mubr.bf16.mxu1 %v658_v51  ;;  %v648_v61 = vmax.f32 %v610_v54, 0.0 }
 0x11a   : > { %v612_v57 = vpop.f32.mrf.mxu0  ;;  %1352 = vmatmul.mubr.bf16.gmra.mxu1 %v659_v52 }
 0x11b   : > { %v613_v58 = vadd.f32 %v1230_v24, %v612_v57  ;;  %v651_v59 = vmax.f32 %v621_v55, 0.0 }
 0x11c   : > { %v1329_v60 = vpop.f32.mrf.mxu0 }
 0x11d   : > { %v649_v62 = vmax.f32 %v613_v58, 0.0  ;;  %v661_v2 = vpack.c.bf16 %v651_v59, %v650_v63  ;;  %v634_v6 = vadd.f32 %v1329_v60, %v1230_v24 }
 0x11e   : > { %v625_v0 = vpop.f32.mrf.mxu0 }
 0x11f   : > { %v660_v1 = vpack.c.bf16 %v649_v62, %v648_v61  ;;  %v626_v4 = vadd.f32 %v1230_v24, %v625_v0  ;;  %v654_v12 = vmax.f32 %v634_v6, 0.0 }
 0x120   : > { %v1330_v3 = vpop.f32.mrf.mxu0 }
 0x121   : > { %v637_v5 = vadd.f32 %v1330_v3, %v1230_v24  ;;  %1355 = vmatprep.mubr.bf16.mxu1 %v660_v1  ;;  %v652_v10 = vmax.f32 %v626_v4, 0.0 }
 0x122   : > { %v628_v7 = vpop.f32.mrf.mxu0  ;;  %1356 = vmatmul.mubr.bf16.gmra.mxu1 %v661_v2 }
 0x123   : > { %v629_v8 = vadd.f32 %v1230_v24, %v628_v7  ;;  %v655_v9 = vmax.f32 %v637_v5, 0.0 }
 0x125   : > { %v653_v11 = vmax.f32 %v629_v8, 0.0  ;;  %v663_v14 = vpack.c.bf16 %v655_v9, %v654_v12 }
 0x127   : > { %v662_v13 = vpack.c.bf16 %v653_v11, %v652_v10 }
 0x129   : > { %1359 = vmatprep.mubr.bf16.mxu1 %v662_v13  ;;  %v880_v13 = vpop.permute.xlu0 %879 }
 0x12a   : > { %1360 = vmatmul.mubr.bf16.gmra.mxu1 %v663_v14 }
 0x1d2   : > { %v1349_v20 = vpop.f32.mrf.mxu1 }
 0x1d3   : > { %v778_v26 = vadd.f32 %v1349_v20, %v1248_v22 }
 0x1d4   : > { %v769_v21 = vpop.f32.mrf.mxu1 }
 0x1d5   : > { %v770_v24 = vadd.f32 %v1248_v22, %v769_v21  ;;  %v834_v33 = vmax.f32 %v778_v26, 0.0 }
 0x1d6   : > { %v1350_v23 = vpop.f32.mrf.mxu1 }
 0x1d7   : > { %v781_v25 = vadd.f32 %v1350_v23, %v1248_v22  ;;  %v832_v31 = vmax.f32 %v770_v24, 0.0 }
 0x1d8   : > { %v772_v27 = vpop.f32.mrf.mxu1 }
 0x1d9   : > { %v773_v28 = vadd.f32 %v1248_v22, %v772_v27  ;;  %v835_v29 = vmax.f32 %v781_v25, 0.0 }
 0x1da   : > { %v1353_v30 = vpop.f32.mrf.mxu1 }
 0x1db   : > { %v833_v32 = vmax.f32 %v773_v28, 0.0  ;;  %v849_v36 = vpack.c.bf16 %v835_v29, %v834_v33  ;;  %v794_v40 = vadd.f32 %v1353_v30, %v1248_v22 }
 0x1dc   : > { %v785_v34 = vpop.f32.mrf.mxu1 }
 0x1dd   : > { %v848_v35 = vpack.c.bf16 %v833_v32, %v832_v31  ;;  %v786_v38 = vadd.f32 %v1248_v22, %v785_v34  ;;  %v838_v47 = vmax.f32 %v794_v40, 0.0 }
 0x1de   : > { %v1354_v37 = vpop.f32.mrf.mxu1 }
 0x1df   : > { %v797_v39 = vadd.f32 %v1354_v37, %v1248_v22  ;;  %1379 = vmatprep.mubr.bf16.mxu0 %v848_v35  ;;  %v836_v45 = vmax.f32 %v786_v38, 0.0 }
 0x1e0   : > { %v788_v41 = vpop.f32.mrf.mxu1  ;;  %1380 = vmatmul.mubr.bf16.vlgmr.msra.gmra.mxu0 %v849_v36 }
 0x1e1   : > { %v789_v42 = vadd.f32 %v1248_v22, %v788_v41  ;;  %v839_v43 = vmax.f32 %v797_v39, 0.0 }
 0x1e2   : > { %v1357_v44 = vpop.f32.mrf.mxu1 }
 0x1e3   : > { %v837_v46 = vmax.f32 %v789_v42, 0.0  ;;  %v851_v50 = vpack.c.bf16 %v839_v43, %v838_v47  ;;  %v810_v54 = vadd.f32 %v1357_v44, %v1248_v22 }
 0x1e4   : > { %v801_v48 = vpop.f32.mrf.mxu1 }
 0x1e5   : > { %v850_v49 = vpack.c.bf16 %v837_v46, %v836_v45  ;;  %v802_v52 = vadd.f32 %v1248_v22, %v801_v48  ;;  %v842_v61 = vmax.f32 %v810_v54, 0.0 }
 0x1e6   : > { %v1358_v51 = vpop.f32.mrf.mxu1 }
 0x1e7   : > { %v813_v53 = vadd.f32 %v1358_v51, %v1248_v22  ;;  %1383 = vmatprep.mubr.bf16.mxu0 %v850_v49  ;;  %v840_v59 = vmax.f32 %v802_v52, 0.0 }
 0x1e8   : > { %v804_v55 = vpop.f32.mrf.mxu1  ;;  %1384 = vmatmul.mubr.bf16.gmra.mxu0 %v851_v50 }
 0x1e9   : > { %v805_v56 = vadd.f32 %v1248_v22, %v804_v55  ;;  %v843_v57 = vmax.f32 %v813_v53, 0.0 }
 0x1ea   : > { %v1361_v58 = vpop.f32.mrf.mxu1 }
 0x1eb   : > { %v841_v60 = vmax.f32 %v805_v56, 0.0  ;;  %v853_v0 = vpack.c.bf16 %v843_v57, %v842_v61  ;;  %v826_v4 = vadd.f32 %v1361_v58, %v1248_v22 }
 0x1ec   : > { %v817_v62 = vpop.f32.mrf.mxu1 }
 0x1ed   : > { %v852_v63 = vpack.c.bf16 %v841_v60, %v840_v59  ;;  %v818_v2 = vadd.f32 %v1248_v22, %v817_v62  ;;  %v846_v10 = vmax.f32 %v826_v4, 0.0 }
 0x1ee   : > { %v1362_v1 = vpop.f32.mrf.mxu1 }
 0x1ef   : > { %v829_v3 = vadd.f32 %v1362_v1, %v1248_v22  ;;  %1387 = vmatprep.mubr.bf16.mxu0 %v852_v63  ;;  %v844_v8 = vmax.f32 %v818_v2, 0.0 }
 0x1f0   : > { %v820_v5 = vpop.f32.mrf.mxu1  ;;  %1388 = vmatmul.mubr.bf16.gmra.mxu0 %v853_v0 }
 0x1f1   : > { %v821_v6 = vadd.f32 %v1248_v22, %v820_v5  ;;  %v847_v7 = vmax.f32 %v829_v3, 0.0 }
 0x1f3   : > { %v845_v9 = vmax.f32 %v821_v6, 0.0  ;;  %v855_v12 = vpack.c.bf16 %v847_v7, %v846_v10 }
 0x1f5   : > { %v854_v11 = vpack.c.bf16 %v845_v9, %v844_v8 }
 0x1f7   : > { %1391 = vmatprep.mubr.bf16.mxu0 %v854_v11 }
 0x1f8   : > { %1392 = vmatmul.mubr.bf16.gmra.mxu0 %v855_v12 }
 0x2a0   : > { %v1381_v14 = vpop.f32.mrf.mxu0 }
 0x2a1   : > { %v973_v15 = vadd.f32 %v1381_v14, %v880_v13 }
 0x2a2   : > { %v964_v16 = vpop.f32.mrf.mxu0 }
 0x2a3   : > { %1029 = vst [vmem:[%s1820_s16 + $0x10] sm:$0xff] %v973_v15  ;;  %v965_v17 = vadd.f32 %v964_v16, %v880_v13 }
 0x2a4   : > { %v1382_v18 = vpop.f32.mrf.mxu0 }
 0x2a5   : > { %1027 = vst [vmem:[%s1820_s16] sm:$0xff] %v965_v17  ;;  %v976_v19 = vadd.f32 %v1382_v18, %v880_v13 }
 0x2a6   : > { %v967_v20 = vpop.f32.mrf.mxu0 }
 0x2a7   : > { %1030 = vst [vmem:[%s1820_s16 + $0x18] sm:$0xff] %v976_v19  ;;  %v968_v21 = vadd.f32 %v967_v20, %v880_v13 }
 0x2a8   : > { %v1385_v22 = vpop.f32.mrf.mxu0 }
 0x2a9   : > { %1028 = vst [vmem:[%s1820_s16 + $0x8] sm:$0xff] %v968_v21  ;;  %v989_v23 = vadd.f32 %v1385_v22, %v880_v13 }
 0x2aa   : > { %v980_v24 = vpop.f32.mrf.mxu0 }
 0x2ab   : > { %1033 = vst [vmem:[%s1820_s16 + $0x30] sm:$0xff] %v989_v23  ;;  %v981_v25 = vadd.f32 %v980_v24, %v880_v13 }
 0x2ac   : > { %v1386_v26 = vpop.f32.mrf.mxu0 }
 0x2ad   : > { %1031 = vst [vmem:[%s1820_s16 + $0x20] sm:$0xff] %v981_v25  ;;  %v992_v27 = vadd.f32 %v1386_v26, %v880_v13 }
 0x2ae   : > { %v983_v28 = vpop.f32.mrf.mxu0 }
 0x2af   : > { %1034 = vst [vmem:[%s1820_s16 + $0x38] sm:$0xff] %v992_v27  ;;  %v984_v29 = vadd.f32 %v983_v28, %v880_v13 }
 0x2b0   : > { %v1389_v30 = vpop.f32.mrf.mxu0 }
 0x2b1   : > { %1032 = vst [vmem:[%s1820_s16 + $0x28] sm:$0xff] %v984_v29  ;;  %v1005_v31 = vadd.f32 %v1389_v30, %v880_v13 }
 0x2b2   : > { %v996_v32 = vpop.f32.mrf.mxu0 }
 0x2b3   : > { %1037 = vst [vmem:[%s1820_s16 + $0x50] sm:$0xff] %v1005_v31  ;;  %v997_v33 = vadd.f32 %v996_v32, %v880_v13 }
 0x2b4   : > { %v1390_v34 = vpop.f32.mrf.mxu0 }
 0x2b5   : > { %1035 = vst [vmem:[%s1820_s16 + $0x40] sm:$0xff] %v997_v33  ;;  %v1008_v35 = vadd.f32 %v1390_v34, %v880_v13 }
 0x2b6   : > { %v999_v36 = vpop.f32.mrf.mxu0 }
 0x2b7   : > { %1038 = vst [vmem:[%s1820_s16 + $0x58] sm:$0xff] %v1008_v35  ;;  %v1000_v37 = vadd.f32 %v999_v36, %v880_v13 }
 0x2b8   : > { %v1393_v38 = vpop.f32.mrf.mxu0 }
 0x2b9   : > { %1036 = vst [vmem:[%s1820_s16 + $0x48] sm:$0xff] %v1000_v37  ;;  %v1021_v39 = vadd.f32 %v1393_v38, %v880_v13 }
 0x2ba   : > { %v1012_v40 = vpop.f32.mrf.mxu0 }
 0x2bb   : > { %1041 = vst [vmem:[%s1820_s16 + $0x70] sm:$0xff] %v1021_v39  ;;  %v1013_v41 = vadd.f32 %v1012_v40, %v880_v13 }
 0x2bc   : > { %v1394_v42 = vpop.f32.mrf.mxu0 }
 0x2bd   : > { %1039 = vst [vmem:[%s1820_s16 + $0x60] sm:$0xff] %v1013_v41  ;;  %v1024_v43 = vadd.f32 %v1394_v42, %v880_v13 }
 0x2be   : > { %v1015_v44 = vpop.f32.mrf.mxu0 }
 0x2bf   : > { %1042 = vst [vmem:[%s1820_s16 + $0x78] sm:$0xff] %v1024_v43  ;;  %v1016_v45 = vadd.f32 %v1015_v44, %v880_v13 }
 0x2c1   : > { %1040 = vst [vmem:[%s1820_s16 + $0x68] sm:$0xff] %v1016_v45 }
 0x2c2 PF: > { %s23_s29 = sadd.s32 1, %s1594_s29   ;;  %s1872_s8 = sld [smem:[#allocation8_spill]] }
 0x2c3   : > { %p20_p7 = scmp.ge.s32.totalorder %s23_s29, 4   ;;  %s1873_s24 = smov %s1578_s25 }
 0x2c4   : > { %s1874_s25 = smov %s1582_s26  ;;  %s1875_s26 = smov %s1690_s13 }
 0x2c5   : > { %s1876_s27 = smov %s1590_s28  ;;  %22 = sbr.rel (!%p20_p7) target bundleno = 8 (0x8), region = 116 }
 0x2c8   : > { %s1877_s28 = smov %s1872_s8 }
 0x2ca   :  { %1073 = vsyncpa [#allocation3], 1 }
 0x2cb   :  { %1075 = vsyncpa [#allocation3 + $0x1], 1 }
 0x2cc   :  { %1076 = vsyncpa [#allocation5], 1 }
 0x2cd   :  { %1078 = vsyncpa [#allocation5 + $0x1], 1 }

</bundles_post_ra>
